<compile_context>
chip_gen: v6e
topology: v6e:2x2x1
jax: 0.10.0
libtpu: 0.0.40
codegen_flags: <defaults>
</compile_context>

<pallas_src>
import math
from functools import partial

import jax
import jax.numpy as jnp
from jax.experimental import pallas as pl
from jax.experimental.pallas import tpu as pltpu


# ---------------------------------------------------------------------------
# Fused kernel: B_TILE batch elements per grid step.
# ---------------------------------------------------------------------------
def _mha_fused_kernel(x_ref, wqkv_ref, wout_ref, o_ref, *, heads, dim_head):
    bt, n, d = x_ref.shape
    h, dh = heads, dim_head
    inner = h * dh
    scale = 1.0 / math.sqrt(dh)

    # ---- QKV projection: one lane-dense 2D matmul (bt*n, d) @ (d, 3*inner).
    x2d = x_ref[...].reshape(bt * n, d)
    qkv = jnp.dot(x2d, wqkv_ref[...], preferred_element_type=jnp.float32)

    # w_qkv column order is (three, h, dh): q/k/v slabs start at multiples of
    # inner (128-lane aligned -> free slices); heads are dh-major inside each.
    q = qkv[:, 0 * inner:1 * inner] * scale          # fold 1/sqrt(dh) into q
    k = qkv[:, 1 * inner:2 * inner]
    v = qkv[:, 2 * inner:3 * inner]

    # ---- Per-head scaled-dot-product attention (n, dh tiny; inherently small
    # matmuls).  Exact softmax (no approx reciprocal) for module parity.
    ctx_heads = []
    for head in range(h):
        sl = slice(head * dh, (head + 1) * dh)
        qh = q[:, sl].reshape(bt, n, dh)
        kh = k[:, sl].reshape(bt, n, dh)
        vh = v[:, sl].reshape(bt, n, dh)
        dots = jnp.einsum("bqe,bke->bqk", qh, kh,
                          preferred_element_type=jnp.float32)    # (bt, n, n)
        dots = dots - jnp.max(dots, axis=-1, keepdims=True)
        e = jnp.exp(dots)
        attn = e / jnp.sum(e, axis=-1, keepdims=True)
        ctxh = jnp.einsum("bqk,bke->bqe", attn, vh,
                          preferred_element_type=jnp.float32)    # (bt, n, dh)
        ctx_heads.append(ctxh.reshape(bt * n, dh))

    # Lane-concat -> (bt*n, inner); column order head*dh + e matches w_out's
    # row order, so the 'b h n d -> b n (h d)' rearrange costs nothing extra.
    ctx = jnp.concatenate(ctx_heads, axis=-1)

    # ---- Output projection: one matmul with K = inner (MXU-friendly depth).
    out = jnp.dot(ctx, wout_ref[...], preferred_element_type=jnp.float32)
    o_ref[...] = out.reshape(bt, n, d).astype(o_ref.dtype)


def _pick_b_tile(b):
    # Largest divisor of b that still leaves >= 2 grid steps (v7x megacore),
    # i.e. <= ceil(b/2).  For b == 1 this degenerates to a single step.
    target = max(1, -(-b // 2))
    for cand in range(target, 0, -1):
        if b % cand == 0:
            return cand
    return 1


# ---------------------------------------------------------------------------
# Wrapper: single pallas_call, weights fed in their original layouts.
# ---------------------------------------------------------------------------
@partial(jax.jit, static_argnums=(3, 4))
def multi_head_attention(x, w_qkv, w_out, heads, dim_head):
    """
    x:     (b, n, dim)
    w_qkv: (dim, 3 * heads * dim_head)   (in_features, out_features layout)
    w_out: (heads * dim_head, dim)
    """
    b, n, d = x.shape
    inner = heads * dim_head
    bt = _pick_b_tile(b)

    x_spec = pl.BlockSpec((bt, n, d), lambda i: (i, 0, 0))
    wqkv_spec = pl.BlockSpec((d, 3 * inner), lambda i: (0, 0))   # resident
    wout_spec = pl.BlockSpec((inner, d), lambda i: (0, 0))       # resident

    kernel = partial(_mha_fused_kernel, heads=heads, dim_head=dim_head)

    return pl.pallas_call(
        kernel,
        out_shape=jax.ShapeDtypeStruct((b, n, d), x.dtype),
        grid=(b // bt,),
        in_specs=[x_spec, wqkv_spec, wout_spec],
        out_specs=x_spec,
        compiler_params=pltpu.CompilerParams(
            dimension_semantics=("parallel",),
        ),
    )(x, w_qkv, w_out)


# ---------------------------------------------------------------------------
# Pure-JAX reference (mirrors the PyTorch module; HIGHEST precision so the
# comparison isn't polluted by XLA's default bf16 matmul operands on TPU).
# ---------------------------------------------------------------------------
def reference(x, w_qkv, w_out, heads, dim_head):
    hp = jax.lax.Precision.HIGHEST
    b, n, d = x.shape
    qkv = jnp.matmul(x, w_qkv, precision=hp)
    qkv = qkv.reshape(b, n, 3, heads, dim_head)
    qkv = jnp.transpose(qkv, (2, 0, 3, 1, 4))          # (3, b, h, n, dh)
    q, k, v = qkv[0], qkv[1], qkv[2]
    dots = jnp.einsum("bhqd,bhkd->bhqk", q, k, precision=hp) / math.sqrt(dim_head)
    attn = jax.nn.softmax(dots, axis=-1)
    out = jnp.einsum("bhqk,bhkd->bhqd", attn, v, precision=hp)
    out = jnp.transpose(out, (0, 2, 1, 3)).reshape(b, n, heads * dim_head)
    return jnp.matmul(out, w_out, precision=hp)


if __name__ == "__main__":
    # Module config (dim=32, heads=8, dim_head=64 -> inner_dim=512)
    dim, heads, dim_head = 32, 8, 64
    inner = heads * dim_head
    b, n = 2, 8

    key = jax.random.PRNGKey(0)
    kx, kqkv, kout = jax.random.split(key, 3)

    x = jax.random.normal(kx, (b, n, dim), dtype=jnp.float32)
    w_qkv = jax.random.normal(kqkv, (dim, inner * 3), dtype=jnp.float32) * (
        1.0 / math.sqrt(dim)
    )
    w_out = jax.random.normal(kout, (inner, dim), dtype=jnp.float32) * (
        1.0 / math.sqrt(inner)
    )

    out = multi_head_attention(x, w_qkv, w_out, heads, dim_head)
    out = jax.block_until_ready(out)

    ref = reference(x, w_qkv, w_out, heads, dim_head)
    assert out.shape == (b, n, dim)
    assert jnp.allclose(out, ref, atol=2e-3, rtol=2e-3), "mismatch vs reference"

    print("KERNEL_OK")
</pallas_src>

<mosaic_0001>
module attributes {stable_mosaic.version = 11 : i64} {
  func.func @_mha_fused_kernel(%arg0: i32, %arg1: memref<1x8x32xf32, #tpu.memory_space<vmem>>, %arg2: memref<32x1536xf32, #tpu.memory_space<vmem>>, %arg3: memref<512x32xf32, #tpu.memory_space<vmem>>, %arg4: memref<1x8x32xf32, #tpu.memory_space<vmem>>) attributes {dimension_semantics = [#tpu.dimension_semantics<parallel>], iteration_bounds = array<i64: 2>, scalar_prefetch = 0 : i64, scratch_operands = 0 : i64, tpu.core_type = #tpu.core_type<tc>, window_params = [{transform_indices = @transform_0, window_bounds = array<i64: 1, 8, 32>}, {pipeline_mode = #tpu.pipeline_mode<synchronous>, transform_indices = @transform_1, window_bounds = array<i64: 32, 1536>}, {pipeline_mode = #tpu.pipeline_mode<synchronous>, transform_indices = @transform_2, window_bounds = array<i64: 512, 32>}, {transform_indices = @transform_3, window_bounds = array<i64: 1, 8, 32>}]} {
    %c0 = arith.constant 0 : index
    %c0_0 = arith.constant 0 : index
    %c0_1 = arith.constant 0 : index
    %0 = vector.load %arg1[%c0, %c0_0, %c0_1] : memref<1x8x32xf32, #tpu.memory_space<vmem>>, vector<1x8x32xf32>
    %1 = vector.shape_cast %0 : vector<1x8x32xf32> to vector<8x32xf32>
    %c0_2 = arith.constant 0 : index
    %c0_3 = arith.constant 0 : index
    %2 = vector.load %arg2[%c0_2, %c0_3] : memref<32x1536xf32, #tpu.memory_space<vmem>>, vector<32x1536xf32>
    %cst = arith.constant dense<0.000000e+00> : vector<8x1536xf32>
    %3 = tpu.matmul %1, %2, %cst {dimension_numbers = #tpu.dot_dimension_numbers<[1], [0], [0], [1], [0, 0, 1, 1], [], []>} : vector<8x32xf32>, vector<32x1536xf32>, vector<8x1536xf32> -> vector<8x1536xf32>
    %4 = vector.extract_strided_slice %3 {offsets = [0, 0], sizes = [8, 512], strides = [1, 1]} : vector<8x1536xf32> to vector<8x512xf32>
    %cst_4 = arith.constant 1.250000e-01 : f32
    %5 = vector.broadcast %cst_4 : f32 to vector<8x512xf32>
    %6 = arith.mulf %4, %5 : vector<8x512xf32>
    %7 = vector.extract_strided_slice %3 {offsets = [0, 512], sizes = [8, 512], strides = [1, 1]} : vector<8x1536xf32> to vector<8x512xf32>
    %8 = vector.extract_strided_slice %3 {offsets = [0, 1024], sizes = [8, 512], strides = [1, 1]} : vector<8x1536xf32> to vector<8x512xf32>
    %9 = vector.extract_strided_slice %6 {offsets = [0, 0], sizes = [8, 64], strides = [1, 1]} : vector<8x512xf32> to vector<8x64xf32>
    %10 = vector.shape_cast %9 : vector<8x64xf32> to vector<1x8x64xf32>
    %11 = vector.extract_strided_slice %7 {offsets = [0, 0], sizes = [8, 64], strides = [1, 1]} : vector<8x512xf32> to vector<8x64xf32>
    %12 = vector.shape_cast %11 : vector<8x64xf32> to vector<1x8x64xf32>
    %13 = vector.extract_strided_slice %8 {offsets = [0, 0], sizes = [8, 64], strides = [1, 1]} : vector<8x512xf32> to vector<8x64xf32>
    %14 = vector.shape_cast %13 : vector<8x64xf32> to vector<1x8x64xf32>
    "tpu.trace_start"() <{level = 10 : i32, message = "bqe,bke->bqk"}> : () -> ()
    %cst_5 = arith.constant dense<0.000000e+00> : vector<1x8x8xf32>
    %15 = tpu.matmul %10, %12, %cst_5 {dimension_numbers = #tpu.dot_dimension_numbers<[2], [2], [1], [1], [0, 0, 0, 1, 1, 1], [0], [0]>} : vector<1x8x64xf32>, vector<1x8x64xf32>, vector<1x8x8xf32> -> vector<1x8x8xf32>
    "tpu.trace_stop"() : () -> ()
    %cst_6 = arith.constant dense<0xFF800000> : vector<1x8xf32>
    %16 = vector.multi_reduction <maximumf>, %15, %cst_6 [2] : vector<1x8x8xf32> to vector<1x8xf32>
    %17 = vector.shape_cast %16 : vector<1x8xf32> to vector<1x8x1xf32>
    %18 = vector.broadcast %17 : vector<1x8x1xf32> to vector<1x8x8xf32>
    %19 = arith.subf %15, %18 : vector<1x8x8xf32>
    %20 = math.exp %19 : vector<1x8x8xf32>
    %cst_7 = arith.constant dense<0.000000e+00> : vector<1x8xf32>
    %21 = vector.multi_reduction <add>, %20, %cst_7 [2] : vector<1x8x8xf32> to vector<1x8xf32>
    %22 = vector.shape_cast %21 : vector<1x8xf32> to vector<1x8x1xf32>
    %23 = vector.broadcast %22 : vector<1x8x1xf32> to vector<1x8x8xf32>
    %24 = arith.divf %20, %23 : vector<1x8x8xf32>
    "tpu.trace_start"() <{level = 10 : i32, message = "bqk,bke->bqe"}> : () -> ()
    %cst_8 = arith.constant dense<0.000000e+00> : vector<1x8x64xf32>
    %25 = tpu.matmul %24, %14, %cst_8 {dimension_numbers = #tpu.dot_dimension_numbers<[2], [1], [1], [2], [0, 0, 0, 1, 1, 2], [0], [0]>} : vector<1x8x8xf32>, vector<1x8x64xf32>, vector<1x8x64xf32> -> vector<1x8x64xf32>
    "tpu.trace_stop"() : () -> ()
    %26 = vector.shape_cast %25 : vector<1x8x64xf32> to vector<8x64xf32>
    %27 = vector.extract_strided_slice %6 {offsets = [0, 64], sizes = [8, 64], strides = [1, 1]} : vector<8x512xf32> to vector<8x64xf32>
    %28 = vector.shape_cast %27 : vector<8x64xf32> to vector<1x8x64xf32>
    %29 = vector.extract_strided_slice %7 {offsets = [0, 64], sizes = [8, 64], strides = [1, 1]} : vector<8x512xf32> to vector<8x64xf32>
    %30 = vector.shape_cast %29 : vector<8x64xf32> to vector<1x8x64xf32>
    %31 = vector.extract_strided_slice %8 {offsets = [0, 64], sizes = [8, 64], strides = [1, 1]} : vector<8x512xf32> to vector<8x64xf32>
    %32 = vector.shape_cast %31 : vector<8x64xf32> to vector<1x8x64xf32>
    "tpu.trace_start"() <{level = 10 : i32, message = "bqe,bke->bqk"}> : () -> ()
    %cst_9 = arith.constant dense<0.000000e+00> : vector<1x8x8xf32>
    %33 = tpu.matmul %28, %30, %cst_9 {dimension_numbers = #tpu.dot_dimension_numbers<[2], [2], [1], [1], [0, 0, 0, 1, 1, 1], [0], [0]>} : vector<1x8x64xf32>, vector<1x8x64xf32>, vector<1x8x8xf32> -> vector<1x8x8xf32>
    "tpu.trace_stop"() : () -> ()
    %cst_10 = arith.constant dense<0xFF800000> : vector<1x8xf32>
    %34 = vector.multi_reduction <maximumf>, %33, %cst_10 [2] : vector<1x8x8xf32> to vector<1x8xf32>
    %35 = vector.shape_cast %34 : vector<1x8xf32> to vector<1x8x1xf32>
    %36 = vector.broadcast %35 : vector<1x8x1xf32> to vector<1x8x8xf32>
    %37 = arith.subf %33, %36 : vector<1x8x8xf32>
    %38 = math.exp %37 : vector<1x8x8xf32>
    %cst_11 = arith.constant dense<0.000000e+00> : vector<1x8xf32>
    %39 = vector.multi_reduction <add>, %38, %cst_11 [2] : vector<1x8x8xf32> to vector<1x8xf32>
    %40 = vector.shape_cast %39 : vector<1x8xf32> to vector<1x8x1xf32>
    %41 = vector.broadcast %40 : vector<1x8x1xf32> to vector<1x8x8xf32>
    %42 = arith.divf %38, %41 : vector<1x8x8xf32>
    "tpu.trace_start"() <{level = 10 : i32, message = "bqk,bke->bqe"}> : () -> ()
    %cst_12 = arith.constant dense<0.000000e+00> : vector<1x8x64xf32>
    %43 = tpu.matmul %42, %32, %cst_12 {dimension_numbers = #tpu.dot_dimension_numbers<[2], [1], [1], [2], [0, 0, 0, 1, 1, 2], [0], [0]>} : vector<1x8x8xf32>, vector<1x8x64xf32>, vector<1x8x64xf32> -> vector<1x8x64xf32>
    "tpu.trace_stop"() : () -> ()
    %44 = vector.shape_cast %43 : vector<1x8x64xf32> to vector<8x64xf32>
    %45 = vector.extract_strided_slice %6 {offsets = [0, 128], sizes = [8, 64], strides = [1, 1]} : vector<8x512xf32> to vector<8x64xf32>
    %46 = vector.shape_cast %45 : vector<8x64xf32> to vector<1x8x64xf32>
    %47 = vector.extract_strided_slice %7 {offsets = [0, 128], sizes = [8, 64], strides = [1, 1]} : vector<8x512xf32> to vector<8x64xf32>
    %48 = vector.shape_cast %47 : vector<8x64xf32> to vector<1x8x64xf32>
    %49 = vector.extract_strided_slice %8 {offsets = [0, 128], sizes = [8, 64], strides = [1, 1]} : vector<8x512xf32> to vector<8x64xf32>
    %50 = vector.shape_cast %49 : vector<8x64xf32> to vector<1x8x64xf32>
    "tpu.trace_start"() <{level = 10 : i32, message = "bqe,bke->bqk"}> : () -> ()
    %cst_13 = arith.constant dense<0.000000e+00> : vector<1x8x8xf32>
    %51 = tpu.matmul %46, %48, %cst_13 {dimension_numbers = #tpu.dot_dimension_numbers<[2], [2], [1], [1], [0, 0, 0, 1, 1, 1], [0], [0]>} : vector<1x8x64xf32>, vector<1x8x64xf32>, vector<1x8x8xf32> -> vector<1x8x8xf32>
    "tpu.trace_stop"() : () -> ()
    %cst_14 = arith.constant dense<0xFF800000> : vector<1x8xf32>
    %52 = vector.multi_reduction <maximumf>, %51, %cst_14 [2] : vector<1x8x8xf32> to vector<1x8xf32>
    %53 = vector.shape_cast %52 : vector<1x8xf32> to vector<1x8x1xf32>
    %54 = vector.broadcast %53 : vector<1x8x1xf32> to vector<1x8x8xf32>
    %55 = arith.subf %51, %54 : vector<1x8x8xf32>
    %56 = math.exp %55 : vector<1x8x8xf32>
    %cst_15 = arith.constant dense<0.000000e+00> : vector<1x8xf32>
    %57 = vector.multi_reduction <add>, %56, %cst_15 [2] : vector<1x8x8xf32> to vector<1x8xf32>
    %58 = vector.shape_cast %57 : vector<1x8xf32> to vector<1x8x1xf32>
    %59 = vector.broadcast %58 : vector<1x8x1xf32> to vector<1x8x8xf32>
    %60 = arith.divf %56, %59 : vector<1x8x8xf32>
    "tpu.trace_start"() <{level = 10 : i32, message = "bqk,bke->bqe"}> : () -> ()
    %cst_16 = arith.constant dense<0.000000e+00> : vector<1x8x64xf32>
    %61 = tpu.matmul %60, %50, %cst_16 {dimension_numbers = #tpu.dot_dimension_numbers<[2], [1], [1], [2], [0, 0, 0, 1, 1, 2], [0], [0]>} : vector<1x8x8xf32>, vector<1x8x64xf32>, vector<1x8x64xf32> -> vector<1x8x64xf32>
    "tpu.trace_stop"() : () -> ()
    %62 = vector.shape_cast %61 : vector<1x8x64xf32> to vector<8x64xf32>
    %63 = vector.extract_strided_slice %6 {offsets = [0, 192], sizes = [8, 64], strides = [1, 1]} : vector<8x512xf32> to vector<8x64xf32>
    %64 = vector.shape_cast %63 : vector<8x64xf32> to vector<1x8x64xf32>
    %65 = vector.extract_strided_slice %7 {offsets = [0, 192], sizes = [8, 64], strides = [1, 1]} : vector<8x512xf32> to vector<8x64xf32>
    %66 = vector.shape_cast %65 : vector<8x64xf32> to vector<1x8x64xf32>
    %67 = vector.extract_strided_slice %8 {offsets = [0, 192], sizes = [8, 64], strides = [1, 1]} : vector<8x512xf32> to vector<8x64xf32>
    %68 = vector.shape_cast %67 : vector<8x64xf32> to vector<1x8x64xf32>
    "tpu.trace_start"() <{level = 10 : i32, message = "bqe,bke->bqk"}> : () -> ()
    %cst_17 = arith.constant dense<0.000000e+00> : vector<1x8x8xf32>
    %69 = tpu.matmul %64, %66, %cst_17 {dimension_numbers = #tpu.dot_dimension_numbers<[2], [2], [1], [1], [0, 0, 0, 1, 1, 1], [0], [0]>} : vector<1x8x64xf32>, vector<1x8x64xf32>, vector<1x8x8xf32> -> vector<1x8x8xf32>
    "tpu.trace_stop"() : () -> ()
    %cst_18 = arith.constant dense<0xFF800000> : vector<1x8xf32>
    %70 = vector.multi_reduction <maximumf>, %69, %cst_18 [2] : vector<1x8x8xf32> to vector<1x8xf32>
    %71 = vector.shape_cast %70 : vector<1x8xf32> to vector<1x8x1xf32>
    %72 = vector.broadcast %71 : vector<1x8x1xf32> to vector<1x8x8xf32>
    %73 = arith.subf %69, %72 : vector<1x8x8xf32>
    %74 = math.exp %73 : vector<1x8x8xf32>
    %cst_19 = arith.constant dense<0.000000e+00> : vector<1x8xf32>
    %75 = vector.multi_reduction <add>, %74, %cst_19 [2] : vector<1x8x8xf32> to vector<1x8xf32>
    %76 = vector.shape_cast %75 : vector<1x8xf32> to vector<1x8x1xf32>
    %77 = vector.broadcast %76 : vector<1x8x1xf32> to vector<1x8x8xf32>
    %78 = arith.divf %74, %77 : vector<1x8x8xf32>
    "tpu.trace_start"() <{level = 10 : i32, message = "bqk,bke->bqe"}> : () -> ()
    %cst_20 = arith.constant dense<0.000000e+00> : vector<1x8x64xf32>
    %79 = tpu.matmul %78, %68, %cst_20 {dimension_numbers = #tpu.dot_dimension_numbers<[2], [1], [1], [2], [0, 0, 0, 1, 1, 2], [0], [0]>} : vector<1x8x8xf32>, vector<1x8x64xf32>, vector<1x8x64xf32> -> vector<1x8x64xf32>
    "tpu.trace_stop"() : () -> ()
    %80 = vector.shape_cast %79 : vector<1x8x64xf32> to vector<8x64xf32>
    %81 = vector.extract_strided_slice %6 {offsets = [0, 256], sizes = [8, 64], strides = [1, 1]} : vector<8x512xf32> to vector<8x64xf32>
    %82 = vector.shape_cast %81 : vector<8x64xf32> to vector<1x8x64xf32>
    %83 = vector.extract_strided_slice %7 {offsets = [0, 256], sizes = [8, 64], strides = [1, 1]} : vector<8x512xf32> to vector<8x64xf32>
    %84 = vector.shape_cast %83 : vector<8x64xf32> to vector<1x8x64xf32>
    %85 = vector.extract_strided_slice %8 {offsets = [0, 256], sizes = [8, 64], strides = [1, 1]} : vector<8x512xf32> to vector<8x64xf32>
    %86 = vector.shape_cast %85 : vector<8x64xf32> to vector<1x8x64xf32>
    "tpu.trace_start"() <{level = 10 : i32, message = "bqe,bke->bqk"}> : () -> ()
    %cst_21 = arith.constant dense<0.000000e+00> : vector<1x8x8xf32>
    %87 = tpu.matmul %82, %84, %cst_21 {dimension_numbers = #tpu.dot_dimension_numbers<[2], [2], [1], [1], [0, 0, 0, 1, 1, 1], [0], [0]>} : vector<1x8x64xf32>, vector<1x8x64xf32>, vector<1x8x8xf32> -> vector<1x8x8xf32>
    "tpu.trace_stop"() : () -> ()
    %cst_22 = arith.constant dense<0xFF800000> : vector<1x8xf32>
    %88 = vector.multi_reduction <maximumf>, %87, %cst_22 [2] : vector<1x8x8xf32> to vector<1x8xf32>
    %89 = vector.shape_cast %88 : vector<1x8xf32> to vector<1x8x1xf32>
    %90 = vector.broadcast %89 : vector<1x8x1xf32> to vector<1x8x8xf32>
    %91 = arith.subf %87, %90 : vector<1x8x8xf32>
    %92 = math.exp %91 : vector<1x8x8xf32>
    %cst_23 = arith.constant dense<0.000000e+00> : vector<1x8xf32>
    %93 = vector.multi_reduction <add>, %92, %cst_23 [2] : vector<1x8x8xf32> to vector<1x8xf32>
    %94 = vector.shape_cast %93 : vector<1x8xf32> to vector<1x8x1xf32>
    %95 = vector.broadcast %94 : vector<1x8x1xf32> to vector<1x8x8xf32>
    %96 = arith.divf %92, %95 : vector<1x8x8xf32>
    "tpu.trace_start"() <{level = 10 : i32, message = "bqk,bke->bqe"}> : () -> ()
    %cst_24 = arith.constant dense<0.000000e+00> : vector<1x8x64xf32>
    %97 = tpu.matmul %96, %86, %cst_24 {dimension_numbers = #tpu.dot_dimension_numbers<[2], [1], [1], [2], [0, 0, 0, 1, 1, 2], [0], [0]>} : vector<1x8x8xf32>, vector<1x8x64xf32>, vector<1x8x64xf32> -> vector<1x8x64xf32>
    "tpu.trace_stop"() : () -> ()
    %98 = vector.shape_cast %97 : vector<1x8x64xf32> to vector<8x64xf32>
    %99 = vector.extract_strided_slice %6 {offsets = [0, 320], sizes = [8, 64], strides = [1, 1]} : vector<8x512xf32> to vector<8x64xf32>
    %100 = vector.shape_cast %99 : vector<8x64xf32> to vector<1x8x64xf32>
    %101 = vector.extract_strided_slice %7 {offsets = [0, 320], sizes = [8, 64], strides = [1, 1]} : vector<8x512xf32> to vector<8x64xf32>
    %102 = vector.shape_cast %101 : vector<8x64xf32> to vector<1x8x64xf32>
    %103 = vector.extract_strided_slice %8 {offsets = [0, 320], sizes = [8, 64], strides = [1, 1]} : vector<8x512xf32> to vector<8x64xf32>
    %104 = vector.shape_cast %103 : vector<8x64xf32> to vector<1x8x64xf32>
    "tpu.trace_start"() <{level = 10 : i32, message = "bqe,bke->bqk"}> : () -> ()
    %cst_25 = arith.constant dense<0.000000e+00> : vector<1x8x8xf32>
    %105 = tpu.matmul %100, %102, %cst_25 {dimension_numbers = #tpu.dot_dimension_numbers<[2], [2], [1], [1], [0, 0, 0, 1, 1, 1], [0], [0]>} : vector<1x8x64xf32>, vector<1x8x64xf32>, vector<1x8x8xf32> -> vector<1x8x8xf32>
    "tpu.trace_stop"() : () -> ()
    %cst_26 = arith.constant dense<0xFF800000> : vector<1x8xf32>
    %106 = vector.multi_reduction <maximumf>, %105, %cst_26 [2] : vector<1x8x8xf32> to vector<1x8xf32>
    %107 = vector.shape_cast %106 : vector<1x8xf32> to vector<1x8x1xf32>
    %108 = vector.broadcast %107 : vector<1x8x1xf32> to vector<1x8x8xf32>
    %109 = arith.subf %105, %108 : vector<1x8x8xf32>
    %110 = math.exp %109 : vector<1x8x8xf32>
    %cst_27 = arith.constant dense<0.000000e+00> : vector<1x8xf32>
    %111 = vector.multi_reduction <add>, %110, %cst_27 [2] : vector<1x8x8xf32> to vector<1x8xf32>
    %112 = vector.shape_cast %111 : vector<1x8xf32> to vector<1x8x1xf32>
    %113 = vector.broadcast %112 : vector<1x8x1xf32> to vector<1x8x8xf32>
    %114 = arith.divf %110, %113 : vector<1x8x8xf32>
    "tpu.trace_start"() <{level = 10 : i32, message = "bqk,bke->bqe"}> : () -> ()
    %cst_28 = arith.constant dense<0.000000e+00> : vector<1x8x64xf32>
    %115 = tpu.matmul %114, %104, %cst_28 {dimension_numbers = #tpu.dot_dimension_numbers<[2], [1], [1], [2], [0, 0, 0, 1, 1, 2], [0], [0]>} : vector<1x8x8xf32>, vector<1x8x64xf32>, vector<1x8x64xf32> -> vector<1x8x64xf32>
    "tpu.trace_stop"() : () -> ()
    %116 = vector.shape_cast %115 : vector<1x8x64xf32> to vector<8x64xf32>
    %117 = vector.extract_strided_slice %6 {offsets = [0, 384], sizes = [8, 64], strides = [1, 1]} : vector<8x512xf32> to vector<8x64xf32>
    %118 = vector.shape_cast %117 : vector<8x64xf32> to vector<1x8x64xf32>
    %119 = vector.extract_strided_slice %7 {offsets = [0, 384], sizes = [8, 64], strides = [1, 1]} : vector<8x512xf32> to vector<8x64xf32>
    %120 = vector.shape_cast %119 : vector<8x64xf32> to vector<1x8x64xf32>
    %121 = vector.extract_strided_slice %8 {offsets = [0, 384], sizes = [8, 64], strides = [1, 1]} : vector<8x512xf32> to vector<8x64xf32>
    %122 = vector.shape_cast %121 : vector<8x64xf32> to vector<1x8x64xf32>
    "tpu.trace_start"() <{level = 10 : i32, message = "bqe,bke->bqk"}> : () -> ()
    %cst_29 = arith.constant dense<0.000000e+00> : vector<1x8x8xf32>
    %123 = tpu.matmul %118, %120, %cst_29 {dimension_numbers = #tpu.dot_dimension_numbers<[2], [2], [1], [1], [0, 0, 0, 1, 1, 1], [0], [0]>} : vector<1x8x64xf32>, vector<1x8x64xf32>, vector<1x8x8xf32> -> vector<1x8x8xf32>
    "tpu.trace_stop"() : () -> ()
    %cst_30 = arith.constant dense<0xFF800000> : vector<1x8xf32>
    %124 = vector.multi_reduction <maximumf>, %123, %cst_30 [2] : vector<1x8x8xf32> to vector<1x8xf32>
    %125 = vector.shape_cast %124 : vector<1x8xf32> to vector<1x8x1xf32>
    %126 = vector.broadcast %125 : vector<1x8x1xf32> to vector<1x8x8xf32>
    %127 = arith.subf %123, %126 : vector<1x8x8xf32>
    %128 = math.exp %127 : vector<1x8x8xf32>
    %cst_31 = arith.constant dense<0.000000e+00> : vector<1x8xf32>
    %129 = vector.multi_reduction <add>, %128, %cst_31 [2] : vector<1x8x8xf32> to vector<1x8xf32>
    %130 = vector.shape_cast %129 : vector<1x8xf32> to vector<1x8x1xf32>
    %131 = vector.broadcast %130 : vector<1x8x1xf32> to vector<1x8x8xf32>
    %132 = arith.divf %128, %131 : vector<1x8x8xf32>
    "tpu.trace_start"() <{level = 10 : i32, message = "bqk,bke->bqe"}> : () -> ()
    %cst_32 = arith.constant dense<0.000000e+00> : vector<1x8x64xf32>
    %133 = tpu.matmul %132, %122, %cst_32 {dimension_numbers = #tpu.dot_dimension_numbers<[2], [1], [1], [2], [0, 0, 0, 1, 1, 2], [0], [0]>} : vector<1x8x8xf32>, vector<1x8x64xf32>, vector<1x8x64xf32> -> vector<1x8x64xf32>
    "tpu.trace_stop"() : () -> ()
    %134 = vector.shape_cast %133 : vector<1x8x64xf32> to vector<8x64xf32>
    %135 = vector.extract_strided_slice %6 {offsets = [0, 448], sizes = [8, 64], strides = [1, 1]} : vector<8x512xf32> to vector<8x64xf32>
    %136 = vector.shape_cast %135 : vector<8x64xf32> to vector<1x8x64xf32>
    %137 = vector.extract_strided_slice %7 {offsets = [0, 448], sizes = [8, 64], strides = [1, 1]} : vector<8x512xf32> to vector<8x64xf32>
    %138 = vector.shape_cast %137 : vector<8x64xf32> to vector<1x8x64xf32>
    %139 = vector.extract_strided_slice %8 {offsets = [0, 448], sizes = [8, 64], strides = [1, 1]} : vector<8x512xf32> to vector<8x64xf32>
    %140 = vector.shape_cast %139 : vector<8x64xf32> to vector<1x8x64xf32>
    "tpu.trace_start"() <{level = 10 : i32, message = "bqe,bke->bqk"}> : () -> ()
    %cst_33 = arith.constant dense<0.000000e+00> : vector<1x8x8xf32>
    %141 = tpu.matmul %136, %138, %cst_33 {dimension_numbers = #tpu.dot_dimension_numbers<[2], [2], [1], [1], [0, 0, 0, 1, 1, 1], [0], [0]>} : vector<1x8x64xf32>, vector<1x8x64xf32>, vector<1x8x8xf32> -> vector<1x8x8xf32>
    "tpu.trace_stop"() : () -> ()
    %cst_34 = arith.constant dense<0xFF800000> : vector<1x8xf32>
    %142 = vector.multi_reduction <maximumf>, %141, %cst_34 [2] : vector<1x8x8xf32> to vector<1x8xf32>
    %143 = vector.shape_cast %142 : vector<1x8xf32> to vector<1x8x1xf32>
    %144 = vector.broadcast %143 : vector<1x8x1xf32> to vector<1x8x8xf32>
    %145 = arith.subf %141, %144 : vector<1x8x8xf32>
    %146 = math.exp %145 : vector<1x8x8xf32>
    %cst_35 = arith.constant dense<0.000000e+00> : vector<1x8xf32>
    %147 = vector.multi_reduction <add>, %146, %cst_35 [2] : vector<1x8x8xf32> to vector<1x8xf32>
    %148 = vector.shape_cast %147 : vector<1x8xf32> to vector<1x8x1xf32>
    %149 = vector.broadcast %148 : vector<1x8x1xf32> to vector<1x8x8xf32>
    %150 = arith.divf %146, %149 : vector<1x8x8xf32>
    "tpu.trace_start"() <{level = 10 : i32, message = "bqk,bke->bqe"}> : () -> ()
    %cst_36 = arith.constant dense<0.000000e+00> : vector<1x8x64xf32>
    %151 = tpu.matmul %150, %140, %cst_36 {dimension_numbers = #tpu.dot_dimension_numbers<[2], [1], [1], [2], [0, 0, 0, 1, 1, 2], [0], [0]>} : vector<1x8x8xf32>, vector<1x8x64xf32>, vector<1x8x64xf32> -> vector<1x8x64xf32>
    "tpu.trace_stop"() : () -> ()
    %152 = vector.shape_cast %151 : vector<1x8x64xf32> to vector<8x64xf32>
    %153 = tpu.concatenate %26, %44, %62, %80, %98, %116, %134, %152 in 1 : vector<8x64xf32>, vector<8x64xf32>, vector<8x64xf32>, vector<8x64xf32>, vector<8x64xf32>, vector<8x64xf32>, vector<8x64xf32>, vector<8x64xf32> -> vector<8x512xf32>
    %c0_37 = arith.constant 0 : index
    %c0_38 = arith.constant 0 : index
    %154 = vector.load %arg3[%c0_37, %c0_38] : memref<512x32xf32, #tpu.memory_space<vmem>>, vector<512x32xf32>
    %cst_39 = arith.constant dense<0.000000e+00> : vector<8x32xf32>
    %155 = tpu.matmul %153, %154, %cst_39 {dimension_numbers = #tpu.dot_dimension_numbers<[1], [0], [0], [1], [0, 0, 1, 1], [], []>} : vector<8x512xf32>, vector<512x32xf32>, vector<8x32xf32> -> vector<8x32xf32>
    %156 = vector.shape_cast %155 : vector<8x32xf32> to vector<1x8x32xf32>
    %c0_40 = arith.constant 0 : index
    %c0_41 = arith.constant 0 : index
    %c0_42 = arith.constant 0 : index
    %157 = vector.load %arg4[%c0_40, %c0_41, %c0_42] : memref<1x8x32xf32, #tpu.memory_space<vmem>>, vector<1x8x32xf32>
    tpu.vector_store %arg4[%c0_40, %c0_41, %c0_42], %156 {strides = array<i32>} : memref<1x8x32xf32, #tpu.memory_space<vmem>>, vector<1x8x32xf32>,
    return
  }
  func.func @transform_0(%arg0: i32) -> (i32, i32, i32) {
    %c0_i32 = arith.constant 0 : i32
    %c0_i32_0 = arith.constant 0 : i32
    %c0_i32_1 = arith.constant 0 : i32
    return %arg0, %c0_i32, %c0_i32_0 : i32, i32, i32
  }
  func.func @transform_1(%arg0: i32) -> (i32, i32) {
    %c0_i32 = arith.constant 0 : i32
    %c0_i32_0 = arith.constant 0 : i32
    %c0_i32_1 = arith.constant 0 : i32
    return %c0_i32, %c0_i32_0 : i32, i32
  }
  func.func @transform_2(%arg0: i32) -> (i32, i32) {
    %c0_i32 = arith.constant 0 : i32
    %c0_i32_0 = arith.constant 0 : i32
    %c0_i32_1 = arith.constant 0 : i32
    return %c0_i32, %c0_i32_0 : i32, i32
  }
  func.func @transform_3(%arg0: i32) -> (i32, i32, i32) {
    %c0_i32 = arith.constant 0 : i32
    %c0_i32_0 = arith.constant 0 : i32
    %c0_i32_1 = arith.constant 0 : i32
    return %arg0, %c0_i32, %c0_i32_0 : i32, i32, i32
  }
}

</mosaic_0001>

<bundles_post_ra>
// kernel: multi_head_attention.1
= control target key start
LH: loop header
LB: loop body
LE: loop exit
PB: predicated region body
PF: predicated region fallthrough
CT: control target
= control target key end

     0   :  { %8 = vsyncpa [#allocation3], 0  ;;  %s3221_s0 = inlined_call_operand.vmem [shape: f32[2,8,32], index: 0, kind: input, shape index: {}]   ;;  %s3222_s1 = inlined_call_operand.vmem [shape: f32[32,1536], index: 1, kind: input, shape index: {}]   ;;  %s3223_s2 = inlined_call_operand.vmem [shape: f32[512,32], index: 2, kind: input, shape index: {}]   ;;  %s3224_s3 = inlined_call_operand.hbm [shape: f32[2,8,32], index: 3, kind: output, shape index: {}]  }
   0x1   :  { %10 = vsyncpa [#allocation3 + $0x1], 0  ;;  %s2645_s12 = smov 0   ;;  %s2647_s13 = smov 0  }
   0x2   :  { %s2649_s14 = smov 0   ;;  %s2651_s15 = smov 0  }
   0x3 LB: > { %s2666_s16 = sadd.s32 4294967295, %s2619_s15   ;;  %s2253_s17 = sadd.s32 4294967294, %s2619_s15   ;;  %s2619_s15 = sphi %s2651_s15, %s3230_s15   ;;  %s2615_s14 = sphi %s2649_s14, %s3229_s14   ;;  %s2611_s13 = sphi %s2647_s13, %s3228_s13   ;;  %s2607_s12 = sphi %s2645_s12, %s3227_s12  }
   0x4   : > { %s2670_s18 = sadd.s32 1, %s2619_s15   ;;  %s91_s19 = sadd.s32 1, %s2615_s14 }
   0x5   : > { %s88_s20 = ssub.s32 %s2619_s15, %s2670_s18  ;;  %p101_p0 = scmp.ne.s32.totalorder %s2615_s14, %s2611_s13 }
   0x6   : > { %p89_p1 = scmp.eq.s32.totalorder %s88_s20, 0  ;;  %p102_p2 = scmp.eq.s32.totalorder %s2666_s16, 1 }
   0x7   : > { %p107_p3 = scmp.ne.s32.totalorder %s2611_s13, %s2607_s12  ;;  %p108_p4 = scmp.eq.s32.totalorder %s2253_s17, 1 }
   0x8   : > { %s2681_s21 = scalar_select %p89_p1, %s2615_s14, %s91_s19  }
   0x9   : > { %p2683_p5 = por %p102_p2, %p101_p0  ;;  %p2687_p6 = por %p108_p4, %p107_p3 }
   0xa   : > { %p2256_p7 = scmp.ge.s32.totalorder %s2619_s15, 1  ;;  %p139_p8 = scmp.lt.s32.totalorder %s2619_s15, 3 }
   0xc   : > { %p140_p9 = pnand %p2256_p7, %p139_p8 }
   0xd   : > { %p162_p10 = scmp.lt.s32.totalorder (!%p140_p9), %s2666_s16, 1  ;;  %s2623_s10 = smov (!%p140_p9), 64  }
   0xe   : > { %143 = sbr.rel (%p140_p9) target bundleno = 1408 (0x580), region = 32  ;;  %s2290_s29 = sshll.u32 (!%p140_p9), %s2666_s16, 7 }
   0xf   : > { %s2624_s11 = smov (!%p140_p9), [#allocation2]  }
  0x13   : > { %v204_v0 = vld [vmem:[%s3222_s1 + $0x128] sm:$0xff]  ;;  %v203_v1 = vld [vmem:[%s3222_s1 + $0x120] sm:$0xff]  ;;  %v2621_v4 = vmov 0.0   ;;  %s163_s7 = scalar_select %p162_p10, %s2666_s16, 1  ;;  %v206_v8 = vld [vmem:[%s3222_s1 + $0x138] sm:$0xff]  ;;  %vm215_vm0 = vcmask 261120  }
  0x14   : > { %v192_v2 = vld [vmem:[%s3222_s1 + $0xc8] sm:$0xff]  ;;  %243 = vmatprep.subr.mxu0 %v204_v0  ;;  %v191_v3 = vld [vmem:[%s3222_s1 + $0xc0] sm:$0xff]  ;;  %283 = vmatprep.mubr.f32.mxu0 %v2621_v4  ;;  %v205_v10 = vld [vmem:[%s3222_s1 + $0x130] sm:$0xff]  ;;  %vm2622_vm1 = vmmov 0   ;;  %vm649_vm2 = vcmask 523264   ;;  %vm726_vm3 = vcmask 64512  }
  0x15   : > { %244 = vmatpush1.msra.mxu0 %v203_v1  ;;  %v180_v5 = vld [vmem:[%s3222_s1 + $0x68] sm:$0xff]  ;;  %354 = vmatprep.mubr.f32.mxu1 %v2621_v4  ;;  %v179_v6 = vld [vmem:[%s3222_s1 + $0x60] sm:$0xff]  ;;  %s2258_s17 = sshll.u32 %s163_s7, 3  ;;  %v194_v11 = vld [vmem:[%s3222_s1 + $0xd8] sm:$0xff]  ;;  %s2192_s7 = scalar_lea.hbm %s3224_s3, %s2290_s29 }
  0x16   : > { %245 = vmatprep.subr.mxu0 %v192_v2  ;;  %v168_v7 = vld [vmem:[%s3222_s1 + $0x8] sm:$0xff]  ;;  %v167_v9 = vld [vmem:[%s3222_s1] sm:$0xff]  ;;  %s165_s28 = scalar_lea.vmem %s3221_s0, %s2258_s17  ;;  %314 = vmatprep.subr.mxu1 %v206_v8  ;;  %v193_v14 = vld [vmem:[%s3222_s1 + $0xd0] sm:$0xff]  ;;  %s2563_s16 = sshll.u32 %s2624_s11, 4  ;;  %s2564_s16 = int_to_ptr.vmem [resolvable:$false] %s2563_s16 }
  0x17   : > { %246 = vmatpush1.msra.mxu0 %v191_v3  ;;  %v2733_v12 = vld [vmem:[%s165_s28] sm:$0xff]  ;;  %v208_v13 = vld [vmem:[%s3222_s1 + $0x148] sm:$0xff]  ;;  %315 = vmatpush1.msra.mxu1 %v205_v10  ;;  %v182_v17 = vld [vmem:[%s3222_s1 + $0x78] sm:$0xff]  ;;  %s2565_s17 = scalar_lea.vmem %s2564_s16, 256 }
  0x18   : > { %247 = vmatprep.subr.mxu0 %v180_v5  ;;  %v207_v15 = vld [vmem:[%s3222_s1 + $0x140] sm:$0xff]  ;;  %316 = vmatprep.subr.mxu1 %v194_v11  ;;  %v196_v16 = vld [vmem:[%s3222_s1 + $0xe8] sm:$0xff]  ;;  %v181_v19 = vld [vmem:[%s3222_s1 + $0x70] sm:$0xff] }
  0x19   : > { %248 = vmatpush1.msra.mxu0 %v179_v6  ;;  %317 = vmatpush1.msra.mxu1 %v193_v14  ;;  %v195_v18 = vld [vmem:[%s3222_s1 + $0xe0] sm:$0xff]  ;;  %v184_v20 = vld [vmem:[%s3222_s1 + $0x88] sm:$0xff]  ;;  %v170_v21 = vld [vmem:[%s3222_s1 + $0x18] sm:$0xff] }
  0x1a   : > { %249 = vmatprep.subr.mxu0 %v168_v7  ;;  %v183_v22 = vld [vmem:[%s3222_s1 + $0x80] sm:$0xff]  ;;  %318 = vmatprep.subr.mxu1 %v182_v17  ;;  %v169_v23 = vld [vmem:[%s3222_s1 + $0x10] sm:$0xff]  ;;  %v172_v24 = vld [vmem:[%s3222_s1 + $0x28] sm:$0xff] }
  0x1b   : > { %250 = vmatpush1.msra.mxu0 %v167_v9  ;;  %319 = vmatpush1.msra.mxu1 %v181_v19  ;;  %v210_v25 = vld [vmem:[%s3222_s1 + $0x158] sm:$0xff]  ;;  %v171_v26 = vld [vmem:[%s3222_s1 + $0x20] sm:$0xff]  ;;  %v209_v27 = vld [vmem:[%s3222_s1 + $0x150] sm:$0xff] }
  0x1c   : > { %2259 = vmatmul.mubr.msk.f32.vlgmr.msra.gmra.mxu0 %vm215_vm0, %v2733_v12  ;;  %385 = vmatprep.subr.mxu0 %v208_v13  ;;  %v198_v28 = vld [vmem:[%s3222_s1 + $0xf8] sm:$0xff]  ;;  %v197_v29 = vld [vmem:[%s3222_s1 + $0xf0] sm:$0xff]  ;;  %v212_v34 = vld [vmem:[%s3222_s1 + $0x168] sm:$0xff] }
  0x1d   : > { %386 = vmatpush1.msra.mxu0 %v207_v15  ;;  %425 = vmatprep.mubr.f32.mxu0 %v2621_v4  ;;  %v186_v30 = vld [vmem:[%s3222_s1 + $0x98] sm:$0xff]  ;;  %v185_v31 = vld [vmem:[%s3222_s1 + $0x90] sm:$0xff]  ;;  %v211_v35 = vld [vmem:[%s3222_s1 + $0x160] sm:$0xff] }
  0x1e   : > { %387 = vmatprep.subr.mxu0 %v196_v16  ;;  %320 = vmatprep.subr.mxu1 %v170_v21  ;;  %v174_v32 = vld [vmem:[%s3222_s1 + $0x38] sm:$0xff]  ;;  %v173_v33 = vld [vmem:[%s3222_s1 + $0x30] sm:$0xff]  ;;  %v200_v36 = vld [vmem:[%s3222_s1 + $0x108] sm:$0xff] }
  0x1f   : > { %388 = vmatpush1.msra.mxu0 %v195_v18  ;;  %321 = vmatpush1.msra.mxu1 %v169_v23  ;;  %v199_v37 = vld [vmem:[%s3222_s1 + $0x100] sm:$0xff]  ;;  %v188_v38 = vld [vmem:[%s3222_s1 + $0xa8] sm:$0xff]  ;;  %v214_v54 = vld [vmem:[%s3222_s1 + $0x178] sm:$0xff] }
  0x20   : > { %389 = vmatprep.subr.mxu0 %v184_v20  ;;  %456 = vmatprep.subr.mxu1 %v210_v25  ;;  %v187_v39 = vld [vmem:[%s3222_s1 + $0xa0] sm:$0xff]  ;;  %v176_v40 = vld [vmem:[%s3222_s1 + $0x48] sm:$0xff]  ;;  %v213_v55 = vld [vmem:[%s3222_s1 + $0x170] sm:$0xff] }
  0x21   : > { %390 = vmatpush1.msra.mxu0 %v183_v22  ;;  %2260 = vmatmul.mubr.msk.f32.vlgmr.msra.gmra.mxu1 %vm215_vm0, %v2733_v12  ;;  %v175_v41 = vld [vmem:[%s3222_s1 + $0x40] sm:$0xff]  ;;  %v202_v56 = vld [vmem:[%s3222_s1 + $0x118] sm:$0xff]  ;;  %v201_v57 = vld [vmem:[%s3222_s1 + $0x110] sm:$0xff] }
  0x22   : > { %391 = vmatprep.subr.mxu0 %v172_v24  ;;  %457 = vmatpush1.msra.mxu1 %v209_v27  ;;  %v190_v58 = vld [vmem:[%s3222_s1 + $0xb8] sm:$0xff]  ;;  %v189_v59 = vld [vmem:[%s3222_s1 + $0xb0] sm:$0xff] }
  0x23   : > { %392 = vmatpush1.msra.mxu0 %v171_v26  ;;  %458 = vmatprep.subr.mxu1 %v198_v28  ;;  %v178_v60 = vld [vmem:[%s3222_s1 + $0x58] sm:$0xff]  ;;  %v177_v61 = vld [vmem:[%s3222_s1 + $0x50] sm:$0xff] }
  0x24   : > { %2261 = vmatmul.mubr.msk.f32.vlgmr.msra.gmra.mxu0 %vm215_vm0, %v2733_v12  ;;  %496 = vmatprep.mubr.f32.mxu1 %v2621_v4 }
  0x25   : > { %459 = vmatpush1.msra.mxu1 %v197_v29  ;;  %567 = vmatprep.mubr.f32.mxu0 %v2621_v4 }
  0x26   : > { %460 = vmatprep.subr.mxu1 %v186_v30  ;;  %527 = vmatprep.subr.mxu0 %v212_v34 }
  0x27   : > { %461 = vmatpush1.msra.mxu1 %v185_v31  ;;  %528 = vmatpush1.msra.mxu0 %v211_v35 }
  0x28   : > { %462 = vmatprep.subr.mxu1 %v174_v32  ;;  %529 = vmatprep.subr.mxu0 %v200_v36 }
  0x29   : > { %463 = vmatpush1.msra.mxu1 %v173_v33  ;;  %530 = vmatpush1.msra.mxu0 %v199_v37 }
  0x2a   : > { %2262 = vmatmul.mubr.msk.f32.vlgmr.msra.gmra.mxu1 %vm215_vm0, %v2733_v12  ;;  %531 = vmatprep.subr.mxu0 %v188_v38 }
  0x2b   : > { %638 = vmatprep.mubr.f32.mxu1 %v2621_v4  ;;  %532 = vmatpush1.msra.mxu0 %v187_v39 }
  0x2c   : > { %533 = vmatprep.subr.mxu0 %v176_v40  ;;  %598 = vmatprep.subr.mxu1 %v214_v54 }
  0x2d   : > { %534 = vmatpush1.msra.mxu0 %v175_v41  ;;  %599 = vmatpush1.msra.mxu1 %v213_v55 }
  0x2e   : > { %2263 = vmatmul.mubr.msk.f32.vlgmr.msra.gmra.mxu0 %vm215_vm0, %v2733_v12  ;;  %2395 = vmatprep.subr.mxu0 %v2621_v4 }
  0x2f   : > { %2397 = vmatprep.mubr.msk.f32.mxu0 %vm2622_vm1, %v2621_v4  ;;  %600 = vmatprep.subr.mxu1 %v202_v56 }
  0x30   : > { %601 = vmatpush1.msra.mxu1 %v201_v57 }
  0x31   : > { %602 = vmatprep.subr.mxu1 %v190_v58 }
  0x32   : > { %603 = vmatpush1.msra.mxu1 %v189_v59 }
  0x33   : > { %604 = vmatprep.subr.mxu1 %v178_v60 }
  0x34   : > { %605 = vmatpush1.msra.mxu1 %v177_v61 }
  0x35   : > { %2400 = vmatprep.subr.mxu1 %v2621_v4  ;;  %2264 = vmatmul.mubr.msk.f32.vlgmr.msra.gmra.mxu1 %vm215_vm0, %v2733_v12 }
  0x36   : > { %2402 = vmatprep.mubr.msk.f32.mxu1 %vm2622_vm1, %v2621_v4 }
  0xdc   : > { %v285_v42 = vpop.f32.mrf.mxu0 }
  0xdd   : > { %v645_v46 = vmul.f32 0.125, %v285_v42 }
  0xde   : > { %v287_v43 = vpop.f32.mrf.mxu0 }
  0xdf   : > { %v646_v49 = vmul.f32 0.125, %v287_v43 }
  0xe1   : > { %v356_v44 = vpop.f32.mrf.mxu1 }
  0xe2   : > { %v647_v50 = vmul.f32 0.125, %v356_v44 }
  0xe3   : > { %v358_v48 = vpop.f32.mrf.mxu1 }
  0xe4   : > { %v427_v45 = vpop.f32.mrf.mxu0  ;;  %v648_v53 = vmul.f32 0.125, %v358_v48 }
  0xe5   : > { %813 = vrot.lane.b32.xlu0 %v427_v45, %s2623_s10  ;;  %2396 = vmatpush3.xpose.msk.msra.mxu0 %vm649_vm2, %v427_v45 }
  0xe6   : > { %v429_v47 = vpop.f32.mrf.mxu0  ;;  %2405 = vmatprep.subr.mxu0 %v2621_v4 }
  0xe7   : > { %1139 = vrot.lane.b32.xlu1 %v429_v47, %s2623_s10 }
  0xe8   : > { %2398 = vmatmul.mubr.msk.f32.vlgmr.msra.gmra.mxu0 %vm649_vm2, %v645_v46 }
  0xe9   : > { %811 = vrot.lane.b32.xlu0 %v645_v46, %s2623_s10  ;;  %2407 = vmatprep.mubr.msk.f32.mxu0 %vm2622_vm1, %v2621_v4 }
  0xea   : > { %v498_v51 = vpop.f32.mrf.mxu1 }
  0xeb   : > { %1137 = vrot.lane.b32.xlu1 %v646_v49, %s2623_s10 }
  0xec   : > { %v500_v52 = vpop.f32.mrf.mxu1 }
  0xed   : > { %1465 = vrot.lane.b32.xlu0 %v498_v51, %s2623_s10 }
  0xee   : > { %v2876_v62 = vpop.f32.mrf.mxu0 }
  0xef   : > { %1463 = vrot.lane.b32.xlu1 %v647_v50, %s2623_s10  ;;  %2401 = vmatpush3.msra.mxu1 %v2876_v62 }
  0xf0   : > { %2410 = vmatprep.subr.mxu1 %v2621_v4  ;;  %v2917_v8 = vpop.f32.mrf.mxu0 }
  0xf1   : > { %1791 = vrot.lane.b32.xlu0 %v500_v52, %s2623_s10 }
  0xf3   : > { %1789 = vrot.lane.b32.xlu1 %v648_v53, %s2623_s10 }
 0x157   : > { %v814_v63 = vpop.permute.xlu0 %813 }
 0x158   : > { %2406 = vmatpush3.xpose.msk.msra.mxu0 %vm649_vm2, %v814_v63 }
 0x159   : > { %2415 = vmatprep.subr.mxu0 %v2621_v4  ;;  %v1140_v1 = vpop.permute.xlu1 %1139 }
 0x15b   : > { %v812_v0 = vpop.permute.xlu0 %811 }
 0x15c   : > { %2408 = vmatmul.mubr.msk.f32.vlgmr.msra.gmra.mxu0 %vm649_vm2, %v812_v0 }
 0x15d   : > { %2416 = vmatpush3.xpose.msk.msra.mxu0 %vm649_vm2, %v429_v47  ;;  %2417 = vmatprep.mubr.msk.f32.mxu0 %vm2622_vm1, %v2621_v4  ;;  %v1138_v2 = vpop.permute.xlu1 %1137 }
 0x15e   : > { %2425 = vmatprep.subr.mxu0 %v2621_v4 }
 0x15f   : > { %v1466_v3 = vpop.permute.xlu0 %1465 }
 0x160   : > { %2418 = vmatmul.mubr.msk.f32.vlgmr.msra.gmra.mxu0 %vm649_vm2, %v646_v49 }
 0x161   : > { %2426 = vmatpush3.xpose.msk.msra.mxu0 %vm649_vm2, %v1140_v1  ;;  %2427 = vmatprep.mubr.msk.f32.mxu0 %vm2622_vm1, %v2621_v4  ;;  %v1464_v5 = vpop.permute.xlu1 %1463 }
 0x162   : > { %2435 = vmatprep.subr.mxu0 %v2621_v4 }
 0x163   : > { %v1792_v6 = vpop.permute.xlu0 %1791 }
 0x164   : > { %2428 = vmatmul.mubr.msk.f32.vlgmr.msra.gmra.mxu0 %vm649_vm2, %v1138_v2 }
 0x165   : > { %2436 = vmatpush3.xpose.msk.msra.mxu0 %vm649_vm2, %v498_v51  ;;  %2437 = vmatprep.mubr.msk.f32.mxu0 %vm2622_vm1, %v2621_v4  ;;  %v1790_v7 = vpop.permute.xlu1 %1789 }
 0x166   : > { %2445 = vmatprep.subr.mxu0 %v2621_v4 }
 0x168   : > { %2438 = vmatmul.mubr.msk.f32.vlgmr.msra.gmra.mxu0 %vm649_vm2, %v647_v50 }
 0x169   : > { %2446 = vmatpush3.xpose.msk.msra.mxu0 %vm649_vm2, %v1466_v3  ;;  %2447 = vmatprep.mubr.msk.f32.mxu0 %vm2622_vm1, %v2621_v4 }
 0x16a   : > { %2455 = vmatprep.subr.mxu0 %v2621_v4 }
 0x16c   : > { %2448 = vmatmul.mubr.msk.f32.vlgmr.msra.gmra.mxu0 %vm649_vm2, %v1464_v5 }
 0x16d   : > { %2456 = vmatpush3.xpose.msk.msra.mxu0 %vm649_vm2, %v500_v52  ;;  %2457 = vmatprep.mubr.msk.f32.mxu0 %vm2622_vm1, %v2621_v4 }
 0x16e   : > { %2465 = vmatprep.subr.mxu0 %v2621_v4 }
 0x170   : > { %2458 = vmatmul.mubr.msk.f32.vlgmr.msra.gmra.mxu0 %vm649_vm2, %v648_v53 }
 0x171   : > { %2466 = vmatpush3.xpose.msk.msra.mxu0 %vm649_vm2, %v1792_v6  ;;  %2467 = vmatprep.mubr.msk.f32.mxu0 %vm2622_vm1, %v2621_v4 }
 0x174   : > { %2468 = vmatmul.mubr.msk.f32.vlgmr.msra.gmra.mxu0 %vm649_vm2, %v1790_v7 }
 0x1a8   : > { %v722_v9 = vpop.f32.mrf.mxu0 }
 0x1a9   : > { %v727_v10 = vsel %vm726_vm3, %v722_v9, -inf }
 0x1aa   : > { %728 = vmax.xlane.f32.xlu0 %v727_v10  ;;  %v2399_v11 = vpop.f32.mrf.mxu0 }
 0x1ab   : > { %v640_v11 = vpop.f32.mrf.mxu1 }
 0x21c   : > { %v885_v12 = vpop.f32.mrf.mxu0 }
 0x21d   : > { %v889_v13 = vsel %vm726_vm3, %v885_v12, -inf }
 0x21e   : > { %890 = vmax.xlane.f32.xlu1 %v889_v13  ;;  %v2409_v14 = vpop.f32.mrf.mxu0 }
 0x220   : > { %v1049_v15 = vpop.f32.mrf.mxu0 }
 0x221   : > { %v1053_v16 = vsel %vm726_vm3, %v1049_v15, -inf }
 0x222   : > { %1054 = vmax.xlane.f32.xlu0 %v1053_v16  ;;  %v2419_v17 = vpop.f32.mrf.mxu0 }
 0x224   : > { %v1211_v18 = vpop.f32.mrf.mxu0 }
 0x225   : > { %v1215_v19 = vsel %vm726_vm3, %v1211_v18, -inf }
 0x226   : > { %1216 = vmax.xlane.f32.xlu0 %v1215_v19  ;;  %v2429_v20 = vpop.f32.mrf.mxu0 }
 0x228   : > { %v1375_v21 = vpop.f32.mrf.mxu0 }
 0x229   : > { %v1379_v22 = vsel %vm726_vm3, %v1375_v21, -inf }
 0x22a   : > { %1380 = vmax.xlane.f32.xlu1 %v1379_v22  ;;  %v2439_v23 = vpop.f32.mrf.mxu0 }
 0x22c   : > { %v1537_v24 = vpop.f32.mrf.mxu0 }
 0x22d   : > { %v1541_v25 = vsel %vm726_vm3, %v1537_v24, -inf }
 0x22e   : > { %1542 = vmax.xlane.f32.xlu0 %v1541_v25  ;;  %v2449_v26 = vpop.f32.mrf.mxu0 }
 0x230   : > { %v1701_v27 = vpop.f32.mrf.mxu0 }
 0x231   : > { %v1705_v28 = vsel %vm726_vm3, %v1701_v27, -inf }
 0x232   : > { %1706 = vmax.xlane.f32.xlu1 %v1705_v28  ;;  %v2459_v29 = vpop.f32.mrf.mxu0 }
 0x233   : > { %v729_v33 = vpop.xlane.xlu0 %728 }
 0x234   : > { %v1863_v30 = vpop.f32.mrf.mxu0  ;;  %v730_v34 = vsub.f32 %v722_v9, %v729_v33 }
 0x235   : > { %v1867_v31 = vsel %vm726_vm3, %v1863_v30, -inf }
 0x236   : > { %1868 = vmax.xlane.f32.xlu0 %v1867_v31  ;;  %v2469_v32 = vpop.f32.mrf.mxu0  ;;  %v731_v35 = vmul.f32 1.442695, %v730_v34 }
 0x238   : > { %2527 = vpow2.f32 %v731_v35 }
 0x243   : > { %901 = vrot.lane.b32.xlu1 %v2876_v62, %s2623_s10 }
 0x245   : > { %v2528_v36 = vpop.eup %2527 }
 0x246   : > { %v733_v37 = vsel %vm726_vm3, %v2528_v36, 0.0 }
 0x267   : > { %734 = vadd.xlane.f32.xlu1 %v733_v37 }
 0x2a7   : > { %v891_v38 = vpop.xlane.xlu1 %890 }
 0x2a8   : > { %v892_v39 = vsub.f32 %v885_v12, %v891_v38  ;;  %v642_v12 = vpop.f32.mrf.mxu1 }
 0x2aa   : > { %v893_v40 = vmul.f32 1.442695, %v892_v39 }
 0x2ab   : > { %v1055_v41 = vpop.xlane.xlu0 %1054 }
 0x2ac   : > { %2529 = vpow2.f32 %v893_v40  ;;  %v1056_v42 = vsub.f32 %v1049_v15, %v1055_v41  ;;  %v2006_v40 = vld [vmem:[%s3223_s2 + $0xf8] sm:$0xff] }
 0x2ad   : > { %v2038_v41 = vld [vmem:[%s3223_s2 + $0x1f8] sm:$0xff]  ;;  %2325 = vmatprep.subr.mxu0 %v2006_v40 }
 0x2ae   : > { %v1057_v43 = vmul.f32 1.442695, %v1056_v42  ;;  %v1990_v42 = vld [vmem:[%s3223_s2 + $0x78] sm:$0xff] }
 0x2af   : > { %v1217_v44 = vpop.xlane.xlu0 %1216  ;;  %2326 = vmatpush3.msra.mxu0 %v1990_v42  ;;  %v1992_v42 = vld [vmem:[%s3223_s2 + $0x88] sm:$0xff] }
 0x2b0   : > { %2531 = vpow2.f32 %v1057_v43  ;;  %v1218_v45 = vsub.f32 %v1211_v18, %v1217_v44  ;;  %v2005_v43 = vld [vmem:[%s3223_s2 + $0xf0] sm:$0xff] }
 0x2b1   : > { %v2037_v44 = vld [vmem:[%s3223_s2 + $0x1f0] sm:$0xff]  ;;  %2327 = vmatprep.subr.mxu0 %v2005_v43  ;;  %v1976_v43 = vld [vmem:[%s3223_s2 + $0x8] sm:$0xff] }
 0x2b2   : > { %v1219_v46 = vmul.f32 1.442695, %v1218_v45  ;;  %v1989_v45 = vld [vmem:[%s3223_s2 + $0x70] sm:$0xff] }
 0x2b3   : > { %v1381_v47 = vpop.xlane.xlu1 %1380  ;;  %2328 = vmatpush3.msra.mxu0 %v1989_v45  ;;  %v1991_v45 = vld [vmem:[%s3223_s2 + $0x80] sm:$0xff] }
 0x2b4   : > { %2533 = vpow2.f32 %v1219_v46  ;;  %v1382_v48 = vsub.f32 %v1375_v21, %v1381_v47  ;;  %v2021_v46 = vld [vmem:[%s3223_s2 + $0x170] sm:$0xff]  ;;  %v2004_v47 = vld [vmem:[%s3223_s2 + $0xe8] sm:$0xff] }
 0x2b5   : > { %2329 = vmatprep.subr.mxu0 %v2004_v47 }
 0x2b6   : > { %v1383_v49 = vmul.f32 1.442695, %v1382_v48  ;;  %v2036_v48 = vld [vmem:[%s3223_s2 + $0x1e8] sm:$0xff] }
 0x2b7   : > { %v1543_v50 = vpop.xlane.xlu0 %1542 }
 0x2b8   : > { %2535 = vpow2.f32 %v1383_v49  ;;  %v1544_v51 = vsub.f32 %v1537_v24, %v1543_v50  ;;  %v1988_v49 = vld [vmem:[%s3223_s2 + $0x68] sm:$0xff] }
 0x2b9   : > { %v2530_v52 = vpop.eup %2529  ;;  %v2020_v50 = vld [vmem:[%s3223_s2 + $0x168] sm:$0xff]  ;;  %2330 = vmatpush3.msra.mxu0 %v1988_v49 }
 0x2ba   : > { %v1545_v53 = vmul.f32 1.442695, %v1544_v51  ;;  %v895_v54 = vsel %vm726_vm3, %v2530_v52, 0.0  ;;  %v2003_v51 = vld [vmem:[%s3223_s2 + $0xe0] sm:$0xff] }
 0x2bb   : > { %v1707_v55 = vpop.xlane.xlu1 %1706  ;;  %896 = vadd.xlane.f32.xlu0 %v895_v54  ;;  %v2019_v54 = vld [vmem:[%s3223_s2 + $0x160] sm:$0xff]  ;;  %2331 = vmatprep.subr.mxu0 %v2003_v51 }
 0x2bc   : > { %2537 = vpow2.f32 %v1545_v53  ;;  %v1708_v56 = vsub.f32 %v1701_v27, %v1707_v55  ;;  %v1987_v53 = vld [vmem:[%s3223_s2 + $0x60] sm:$0xff]  ;;  %v2002_v55 = vld [vmem:[%s3223_s2 + $0xd8] sm:$0xff] }
 0x2bd   : > { %v2532_v57 = vpop.eup %2531  ;;  %2332 = vmatpush3.msra.mxu0 %v1987_v53 }
 0x2be   : > { %v1709_v58 = vmul.f32 1.442695, %v1708_v56  ;;  %v1059_v59 = vsel %vm726_vm3, %v2532_v57, 0.0  ;;  %v2034_v56 = vld [vmem:[%s3223_s2 + $0x1d8] sm:$0xff]  ;;  %2333 = vmatprep.subr.mxu0 %v2002_v55 }
 0x2bf   : > { %1060 = vadd.xlane.f32.xlu1 %v1059_v59  ;;  %v1869_v60 = vpop.xlane.xlu0 %1868  ;;  %v902_v13 = vpop.permute.xlu1 %901  ;;  %v2001_v59 = vld [vmem:[%s3223_s2 + $0xd0] sm:$0xff] }
 0x2c0   : > { %2539 = vpow2.f32 %v1709_v58  ;;  %v1870_v61 = vsub.f32 %v1863_v30, %v1869_v60  ;;  %v2018_v58 = vld [vmem:[%s3223_s2 + $0x158] sm:$0xff]  ;;  %v2033_v60 = vld [vmem:[%s3223_s2 + $0x1d0] sm:$0xff] }
 0x2c1   : > { %v2534_v62 = vpop.eup %2533 }
 0x2c2   : > { %v1871_v63 = vmul.f32 1.442695, %v1870_v61  ;;  %v1221_v0 = vsel %vm726_vm3, %v2534_v62, 0.0  ;;  %v1985_v61 = vld [vmem:[%s3223_s2 + $0x50] sm:$0xff] }
 0x2c3   : > { %1222 = vadd.xlane.f32.xlu0 %v1221_v0  ;;  %v2032_v0 = vld [vmem:[%s3223_s2 + $0x1c8] sm:$0xff] }
 0x2c4   : > { %2541 = vpow2.f32 %v1871_v63  ;;  %v2000_v63 = vld [vmem:[%s3223_s2 + $0xc8] sm:$0xff] }
 0x2c5   : > { %v2536_v1 = vpop.eup %2535 }
 0x2c6   : > { %v1385_v2 = vsel %vm726_vm3, %v2536_v1, 0.0 }
 0x2c7   : > { %1386 = vadd.xlane.f32.xlu1 %v1385_v2  ;;  %v2016_v2 = vld [vmem:[%s3223_s2 + $0x148] sm:$0xff] }
 0x2c9   : > { %v2934_v3 = vpop.eup %2537 }
 0x2ca   : > { %v1547_v5 = vsel %vm726_vm3, %v2934_v3, 0.0 }
 0x2cb   : > { %1548 = vadd.xlane.f32.xlu0 %v1547_v5  ;;  %v1999_v5 = vld [vmem:[%s3223_s2 + $0xc0] sm:$0xff] }
 0x2cd   : > { %v2938_v6 = vpop.eup %2539 }
 0x2ce   : > { %v1711_v7 = vsel %vm726_vm3, %v2938_v6, 0.0 }
 0x2cf   : > { %1712 = vadd.xlane.f32.xlu1 %v1711_v7  ;;  %v1983_v7 = vld [vmem:[%s3223_s2 + $0x40] sm:$0xff] }
 0x2d1   : > { %v2942_v9 = vpop.eup %2541 }
 0x2d2   : > { %v1873_v10 = vsel %vm726_vm3, %v2942_v9, 0.0 }
 0x2d3   : > { %1874 = vadd.xlane.f32.xlu0 %v1873_v10 }
 0x2e0   : > { %1553 = vrot.lane.b32.xlu1 %v640_v11, %s2623_s10 }
 0x2e4   : > { %1879 = vrot.lane.b32.xlu1 %v642_v12, %s2623_s10 }
 0x2e9   : > { %1227 = vrot.lane.b32.xlu0 %v2917_v8, %s2623_s10 }
 0x2f0   : > { %v735_v14 = vpop.xlane.xlu1 %734 }
 0x2f1   : > { %2543 = vrcp.f32 %v735_v14  ;;  %v2014_v14 = vld [vmem:[%s3223_s2 + $0x138] sm:$0xff] }
 0x2fe   : > { %v2544_v15 = vpop.eup %2543 }
 0x2ff   : > { %v737_v16 = vmul.f32 %v2544_v15, %v2528_v36  ;;  %v1997_v15 = vld [vmem:[%s3223_s2 + $0xb0] sm:$0xff] }
 0x301   : > { %2403 = vmatmul.mubr.msk.f32.vlgmr.msra.gmra.mxu1 %vm726_vm3, %v737_v16  ;;  %v2029_v16 = vld [vmem:[%s3223_s2 + $0x1b0] sm:$0xff] }
 0x302   : > { %2411 = vmatpush3.msra.mxu1 %v902_v13  ;;  %2412 = vmatprep.mubr.msk.f32.mxu1 %vm2622_vm1, %v2621_v4  ;;  %v1982_v13 = vld [vmem:[%s3223_s2 + $0x38] sm:$0xff] }
 0x303   : > { %2420 = vmatprep.subr.mxu1 %v2621_v4 }
 0x344   : > { %v897_v17 = vpop.xlane.xlu0 %896 }
 0x345   : > { %2545 = vrcp.f32 %v897_v17  ;;  %v1981_v17 = vld [vmem:[%s3223_s2 + $0x30] sm:$0xff] }
 0x348   : > { %v1061_v18 = vpop.xlane.xlu1 %1060 }
 0x349   : > { %2547 = vrcp.f32 %v1061_v18  ;;  %v2013_v18 = vld [vmem:[%s3223_s2 + $0x130] sm:$0xff] }
 0x34c   : > { %v1223_v19 = vpop.xlane.xlu0 %1222 }
 0x34d   : > { %2549 = vrcp.f32 %v1223_v19 }
 0x350   : > { %v1387_v20 = vpop.xlane.xlu1 %1386 }
 0x351   : > { %2551 = vrcp.f32 %v1387_v20 }
 0x352   : > { %v2546_v21 = vpop.eup %2545 }
 0x353   : > { %v899_v22 = vmul.f32 %v2546_v21, %v2530_v52  ;;  %v2035_v52 = vld [vmem:[%s3223_s2 + $0x1e0] sm:$0xff] }
 0x354   : > { %v1549_v23 = vpop.xlane.xlu0 %1548 }
 0x355   : > { %2413 = vmatmul.mubr.msk.f32.vlgmr.msra.gmra.mxu1 %vm726_vm3, %v899_v22  ;;  %2553 = vrcp.f32 %v1549_v23  ;;  %v1996_v23 = vld [vmem:[%s3223_s2 + $0xa8] sm:$0xff] }
 0x356   : > { %v2548_v24 = vpop.eup %2547  ;;  %2421 = vmatpush3.msra.mxu1 %v2917_v8  ;;  %2422 = vmatprep.mubr.msk.f32.mxu1 %vm2622_vm1, %v2621_v4 }
 0x357   : > { %v1063_v25 = vmul.f32 %v2548_v24, %v2532_v57  ;;  %2430 = vmatprep.subr.mxu1 %v2621_v4  ;;  %v1986_v57 = vld [vmem:[%s3223_s2 + $0x58] sm:$0xff]  ;;  %v2028_v24 = vld [vmem:[%s3223_s2 + $0x1a8] sm:$0xff] }
 0x358   : > { %v1713_v26 = vpop.xlane.xlu1 %1712  ;;  %2334 = vmatpush3.msra.mxu0 %v1986_v57 }
 0x359   : > { %2423 = vmatmul.mubr.msk.f32.vlgmr.msra.gmra.mxu1 %vm726_vm3, %v1063_v25  ;;  %2555 = vrcp.f32 %v1713_v26  ;;  %2335 = vmatprep.subr.mxu0 %v2001_v59  ;;  %v1980_v25 = vld [vmem:[%s3223_s2 + $0x28] sm:$0xff] }
 0x35a   : > { %2432 = vmatprep.mubr.msk.f32.mxu1 %vm2622_vm1, %v2621_v4  ;;  %v2550_v28 = vpop.eup %2549  ;;  %2336 = vmatpush3.msra.mxu0 %v1985_v61  ;;  %v2012_v26 = vld [vmem:[%s3223_s2 + $0x128] sm:$0xff] }
 0x35b   : > { %v1225_v30 = vmul.f32 %v2550_v28, %v2534_v62  ;;  %v2017_v62 = vld [vmem:[%s3223_s2 + $0x150] sm:$0xff]  ;;  %2337 = vmatprep.subr.mxu0 %v2000_v63  ;;  %v2027_v28 = vld [vmem:[%s3223_s2 + $0x1a0] sm:$0xff] }
 0x35c   : > { %v1875_v27 = vpop.xlane.xlu0 %1874  ;;  %v1554_v33 = vpop.permute.xlu1 %1553 }
 0x35d   : > { %2557 = vrcp.f32 %v1875_v27  ;;  %v1995_v27 = vld [vmem:[%s3223_s2 + $0xa0] sm:$0xff] }
 0x35e   : > { %v2552_v8 = vpop.eup %2551 }
 0x35f   : > { %v1389_v31 = vmul.f32 %v2552_v8, %v2536_v1  ;;  %v1984_v1 = vld [vmem:[%s3223_s2 + $0x48] sm:$0xff]  ;;  %v2011_v8 = vld [vmem:[%s3223_s2 + $0x120] sm:$0xff] }
 0x360   : > { %v1228_v29 = vpop.permute.xlu0 %1227  ;;  %v1880_v38 = vpop.permute.xlu1 %1879  ;;  %2338 = vmatpush3.msra.mxu0 %v1984_v1 }
 0x361   : > { %2431 = vmatpush3.msra.mxu1 %v1228_v29  ;;  %2339 = vmatprep.subr.mxu0 %v1999_v5 }
 0x362   : > { %2433 = vmatmul.mubr.msk.f32.vlgmr.msra.gmra.mxu1 %vm726_vm3, %v1225_v30  ;;  %2440 = vmatprep.subr.mxu1 %v2621_v4  ;;  %v2554_v32 = vpop.eup %2553  ;;  %v1979_v30 = vld [vmem:[%s3223_s2 + $0x20] sm:$0xff] }
 0x363   : > { %2441 = vmatpush3.msra.mxu1 %v640_v11  ;;  %2442 = vmatprep.mubr.msk.f32.mxu1 %vm2622_vm1, %v2621_v4  ;;  %v1551_v34 = vmul.f32 %v2554_v32, %v2934_v3  ;;  %v1998_v11 = vld [vmem:[%s3223_s2 + $0xb8] sm:$0xff] }
 0x364   : > { %2450 = vmatprep.subr.mxu1 %v2621_v4  ;;  %2340 = vmatpush3.msra.mxu0 %v1983_v7  ;;  %v2026_v32 = vld [vmem:[%s3223_s2 + $0x198] sm:$0xff] }
 0x365   : > { %2341 = vmatprep.subr.mxu0 %v1998_v11 }
 0x366   : > { %2443 = vmatmul.mubr.msk.f32.vlgmr.msra.gmra.mxu1 %vm726_vm3, %v1389_v31  ;;  %v2556_v35 = vpop.eup %2555  ;;  %2342 = vmatpush3.msra.mxu0 %v1982_v13  ;;  %v1994_v31 = vld [vmem:[%s3223_s2 + $0x98] sm:$0xff] }
 0x367   : > { %2451 = vmatpush3.msra.mxu1 %v1554_v33  ;;  %2452 = vmatprep.mubr.msk.f32.mxu1 %vm2622_vm1, %v2621_v4  ;;  %v1715_v36 = vmul.f32 %v2556_v35, %v2938_v6  ;;  %v2031_v6 = vld [vmem:[%s3223_s2 + $0x1c0] sm:$0xff]  ;;  %v1978_v33 = vld [vmem:[%s3223_s2 + $0x18] sm:$0xff] }
 0x368   : > { %2460 = vmatprep.subr.mxu1 %v2621_v4  ;;  %2343 = vmatprep.subr.mxu0 %v1997_v15 }
 0x369   : > { %2344 = vmatpush3.msra.mxu0 %v1981_v17 }
 0x36a   : > { %2453 = vmatmul.mubr.msk.f32.vlgmr.msra.gmra.mxu1 %vm726_vm3, %v1551_v34  ;;  %v2558_v37 = vpop.eup %2557  ;;  %2345 = vmatprep.subr.mxu0 %v1996_v23  ;;  %v2010_v34 = vld [vmem:[%s3223_s2 + $0x118] sm:$0xff] }
 0x36b   : > { %2461 = vmatpush3.msra.mxu1 %v642_v12  ;;  %2462 = vmatprep.mubr.msk.f32.mxu1 %vm2622_vm1, %v2621_v4  ;;  %v1877_v39 = vmul.f32 %v2558_v37, %v2942_v9  ;;  %v2015_v9 = vld [vmem:[%s3223_s2 + $0x140] sm:$0xff]  ;;  %v2030_v12 = vld [vmem:[%s3223_s2 + $0x1b8] sm:$0xff]  ;;  %v2025_v37 = vld [vmem:[%s3223_s2 + $0x190] sm:$0xff] }
 0x36c   : > { %2470 = vmatprep.subr.mxu1 %v2621_v4  ;;  %2346 = vmatpush3.msra.mxu0 %v1980_v25 }
 0x36d   : > { %2347 = vmatprep.subr.mxu0 %v1995_v27 }
 0x36e   : > { %2463 = vmatmul.mubr.msk.f32.vlgmr.msra.gmra.mxu1 %vm726_vm3, %v1715_v36  ;;  %2348 = vmatpush3.msra.mxu0 %v1979_v30  ;;  %v1993_v36 = vld [vmem:[%s3223_s2 + $0x90] sm:$0xff] }
 0x36f   : > { %2471 = vmatpush3.msra.mxu1 %v1880_v38  ;;  %2472 = vmatprep.mubr.msk.f32.mxu1 %vm2622_vm1, %v2621_v4  ;;  %v2022_v4 = vld [vmem:[%s3223_s2 + $0x178] sm:$0xff]  ;;  %v1977_v38 = vld [vmem:[%s3223_s2 + $0x10] sm:$0xff] }
 0x370   : > { %2360 = vmatprep.subr.mxu1 %v2038_v41  ;;  %2349 = vmatprep.subr.mxu0 %v1994_v31 }
 0x371   : > { %2350 = vmatpush3.msra.mxu0 %v1978_v33 }
 0x372   : > { %2473 = vmatmul.mubr.msk.f32.vlgmr.msra.gmra.mxu1 %vm726_vm3, %v1877_v39  ;;  %v2009_v39 = vld [vmem:[%s3223_s2 + $0x110] sm:$0xff]  ;;  %2351 = vmatprep.subr.mxu0 %v1993_v36 }
 0x373   : > { %2361 = vmatpush3.msra.mxu1 %v2022_v4  ;;  %2352 = vmatpush3.msra.mxu0 %v1977_v38  ;;  %v2024_v4 = vld [vmem:[%s3223_s2 + $0x188] sm:$0xff] }
 0x374   : > { %2362 = vmatprep.subr.mxu1 %v2037_v44  ;;  %2353 = vmatprep.subr.mxu0 %v1992_v42  ;;  %v2008_v44 = vld [vmem:[%s3223_s2 + $0x108] sm:$0xff] }
 0x375   : > { %2363 = vmatpush3.msra.mxu1 %v2021_v46  ;;  %v2023_v46 = vld [vmem:[%s3223_s2 + $0x180] sm:$0xff]  ;;  %2354 = vmatpush3.msra.mxu0 %v1976_v43 }
 0x376   : > { %2364 = vmatprep.subr.mxu1 %v2036_v48  ;;  %v1975_v48 = vld [vmem:[%s3223_s2] sm:$0xff]  ;;  %2355 = vmatprep.subr.mxu0 %v1991_v45 }
 0x377   : > { %2365 = vmatpush3.msra.mxu1 %v2020_v50  ;;  %v2007_v50 = vld [vmem:[%s3223_s2 + $0x100] sm:$0xff]  ;;  %2356 = vmatpush3.msra.mxu0 %v1975_v48 }
 0x378   : > { %2366 = vmatprep.subr.mxu1 %v2035_v52 }
 0x379   : > { %2367 = vmatpush3.msra.mxu1 %v2019_v54 }
 0x37a   : > { %2368 = vmatprep.subr.mxu1 %v2034_v56 }
 0x37b   : > { %2369 = vmatpush3.msra.mxu1 %v2018_v58 }
 0x37c   : > { %2370 = vmatprep.subr.mxu1 %v2033_v60 }
 0x37d   : > { %2371 = vmatpush3.msra.mxu1 %v2017_v62 }
 0x37e   : > { %2372 = vmatprep.subr.mxu1 %v2032_v0 }
 0x37f   : > { %2373 = vmatpush3.msra.mxu1 %v2016_v2 }
 0x380   : > { %2374 = vmatprep.subr.mxu1 %v2031_v6 }
 0x381   : > { %2375 = vmatpush3.msra.mxu1 %v2015_v9 }
 0x382   : > { %2376 = vmatprep.subr.mxu1 %v2030_v12 }
 0x383   : > { %2377 = vmatpush3.msra.mxu1 %v2014_v14 }
 0x384   : > { %2378 = vmatprep.subr.mxu1 %v2029_v16 }
 0x385   : > { %2379 = vmatpush3.msra.mxu1 %v2013_v18 }
 0x386   : > { %2380 = vmatprep.subr.mxu1 %v2028_v24 }
 0x387   : > { %2381 = vmatpush3.msra.mxu1 %v2012_v26 }
 0x388   : > { %2382 = vmatprep.subr.mxu1 %v2027_v28 }
 0x389   : > { %2383 = vmatpush3.msra.mxu1 %v2011_v8 }
 0x38a   : > { %2384 = vmatprep.subr.mxu1 %v2026_v32 }
 0x38b   : > { %2385 = vmatpush3.msra.mxu1 %v2010_v34 }
 0x38c   : > { %2386 = vmatprep.subr.mxu1 %v2025_v37 }
 0x38d   : > { %2387 = vmatpush3.msra.mxu1 %v2009_v39 }
 0x38e   : > { %2388 = vmatprep.subr.mxu1 %v2024_v4 }
 0x38f   : > { %2389 = vmatpush3.msra.mxu1 %v2008_v44 }
 0x390   : > { %2390 = vmatprep.subr.mxu1 %v2023_v46 }
 0x391   : > { %2391 = vmatpush3.msra.mxu1 %v2007_v50 }
 0x3c1   : > { %v3066_v3 = vpop.f32.mrf.mxu1 }
 0x3c3   : > { %v2404_v10 = vpop.f32.mrf.mxu1 }
 0x415   : > { %v973_v19 = vpop.f32.mrf.mxu1 }
 0x417   : > { %v2414_v20 = vpop.f32.mrf.mxu1 }
 0x419   : > { %v3104_v21 = vpop.f32.mrf.mxu1 }
 0x41b   : > { %v2424_v22 = vpop.f32.mrf.mxu1 }
 0x422   : > { %v1299_v29 = vpop.f32.mrf.mxu1 }
 0x424   : > { %v2434_v35 = vpop.f32.mrf.mxu1 }
 0x426   : > { %v1459_v40 = vpop.f32.mrf.mxu1 }
 0x428   : > { %v2444_v41 = vpop.f32.mrf.mxu1 }
 0x42a   : > { %v1625_v47 = vpop.f32.mrf.mxu1 }
 0x42b   : > { %v2522_v49 = vpack.i.bf16 %v1625_v47, %v973_v19 }
 0x42c   : > { %v2454_v51 = vpop.f32.mrf.mxu1 }
 0x42d   : > { %2523 = vrot.lane.b32.xlu1 %v2522_v49, %s2623_s10 }
 0x42e   : > { %v1785_v52 = vpop.f32.mrf.mxu1 }
 0x430   : > { %v2464_v53 = vpop.f32.mrf.mxu1 }
 0x432   : > { %v1951_v54 = vpop.f32.mrf.mxu1 }
 0x433   : > { %v2517_v55 = vpack.i.bf16 %v1951_v54, %v1299_v29 }
 0x434   : > { %v2474_v56 = vpop.f32.mrf.mxu1 }
 0x435   : > { %2518 = vrot.lane.b32.xlu0 %v2517_v55, %s2623_s10  ;;  %s159_s10 = sand.u32 1, %s2611_s13  }
 0x436   : > { %s2257_s28 = sshll.u32 %s159_s10, 3  ;;  %s2181_s8 = scalar_lea.sflag [#allocation3], %s159_s10 }
 0x437   : > { %s161_s30 = scalar_lea.vmem [#allocation2], %s2257_s28 }
 0x438   : > { %s2194_s4 = sshll.u32 %s161_s30, 4  ;;  %s2195_s4 = int_to_ptr.vmem [resolvable:$true] %s2194_s4 }
 0x439   : > { %s2559_s9 = scalar_lea.vmem %s2195_s4, 128  ;;  %p2566_p0 = scmp.lt.s32.totalorder %s2195_s4, %s2564_s16 }
 0x43a   : > { %p2560_p11 = scmp.ne.s32.totalorder %s2195_s4, %s2559_s9  ;;  %p2567_p1 = scmp.lt.s32.totalorder %s2565_s17, %s2559_s9 }
 0x43c   : > { %p2561_p12 = pnand %p2560_p11, %p2683_p5  ;;  %p2568_p2 = por %p2567_p1, %p2566_p0 }
 0x43e   : > { %p2562_p13 = pneg %p2561_p12 }
 0x440   : > { %p2569_p3 = pnand %p2568_p2, %p2562_p13 }
 0x49f   : > { %v2524_v57 = vpop.permute.xlu1 %2523 }
 0x4a0   : > { %v2526_v58 = vunpack.i.h.bf16 %v2524_v57  ;;  %v2525_v59 = vunpack.i.l.bf16 %v2524_v57 }
 0x4a2   : > { %v1971_v1 = vsel %vm649_vm2, %v3066_v3, %v2525_v59  ;;  %v1973_v2 = vsel %vm649_vm2, %v1459_v40, %v2526_v58 }
 0x4a7   : > { %v2519_v60 = vpop.permute.xlu0 %2518 }
 0x4a8   : > { %v2521_v61 = vunpack.i.h.bf16 %v2519_v60  ;;  %v2520_v62 = vunpack.i.l.bf16 %v2519_v60 }
 0x4aa   : > { %v1972_v63 = vsel %vm649_vm2, %v3104_v21, %v2520_v62  ;;  %v1974_v0 = vsel %vm649_vm2, %v1785_v52, %v2521_v61 }
 0x4ab   : > { %2103 = vmatprep.mubr.f32.mxu0 %v1972_v63  ;;  %2173 = vmatprep.mubr.f32.mxu1 %v1974_v0 }
 0x4ac   : > { %2104 = vmatmul.mubr.f32.vlgmr.msra.gmra.mxu0 %v1971_v1  ;;  %2174 = vmatmul.mubr.f32.vlgmr.msra.gmra.mxu1 %v1973_v2 }
 0x56c   : > { %v2357_v5 = vpop.f32.mrf.mxu0  ;;  %v2392_v6 = vpop.f32.mrf.mxu1 }
 0x56e   : > { %v2358_v7 = vpop.f32.mrf.mxu0  ;;  %v2393_v9 = vpop.f32.mrf.mxu1 }
 0x56f   : > { %v2359_v10 = vadd.f32 %v2358_v7, %v2357_v5  ;;  %v2394_v11 = vadd.f32 %v2393_v9, %v2392_v6 }
 0x571   : > { %v2176_v12 = vadd.f32 %v2394_v11, %v2359_v10 }
 0x573   : > { %2179 = vst.msk [vmem:[%s161_s30] sm:$0xff] %vm215_vm0, %v2176_v12 }
 0x574   : > { %2572 = shalt.err (!%p2569_p3)
}
 0x575   : > { %s2573_s19 = scalar_lea.hbm %s2192_s7, 128  ;;  %s2577_s25 = scalar_lea.hbm %s3224_s3, 256 }
 0x576   : > { %p2574_p4 = scmp.ne.s32.totalorder %s2192_s7, %s2573_s19  ;;  %p2578_p9 = scmp.lt.s32.totalorder %s2192_s7, %s3224_s3 }
 0x577   : > { %p2579_p10 = scmp.lt.s32.totalorder %s2577_s25, %s2573_s19 }
 0x578   : > { %p2575_p7 = pnand %p2574_p4, %p2683_p5 }
 0x579   : > { %p2580_p11 = por %p2579_p10, %p2578_p9 }
 0x57a   : > { %p2576_p8 = pneg %p2575_p7 }
 0x57c   : > { %p2581_p12 = pnand %p2580_p11, %p2576_p8 }
 0x57e   : > { %2584 = shalt.err (!%p2581_p12)
}
 0x57f   : > { %2475 = dma.vmem_to_hbm [thread:$0]  (%p2683_p5), %s2195_s4, 128, %s2192_s7, %s2181_s8  }
 0x580 PF: > { %p2481_p13 = scmp.ge.s32.totalorder %s2619_s15, 2  ;;  %s2206_s10 = sand.u32 1, %s2607_s12  }
 0x581   : > { %s2207_s28 = scalar_lea.sflag [#allocation3], %s2206_s10 }
 0x582   : > { %p2478_p0 = pnand %p2481_p13, %p2687_p6 }
 0x584   : > { %p2479_p1 = pneg %p2478_p0 }
 0x586   : > { %2602 = dma.done.wait (%p2479_p1), %s2207_s28, 128  }
 0x587   : > { %2604 = vsyncadd (%p2479_p1), %s2207_s28, 4294967168  ;;  %p13_p2 = scmp.ge.s32.totalorder %s2670_s18, 4   ;;  %s3227_s12 = smov %s2611_s13 }
 0x588   : > { %s3228_s13 = smov %s2615_s14  ;;  %s3229_s14 = smov %s2681_s21 }
 0x589   : > { %s3230_s15 = smov %s2670_s18  ;;  %15 = sbr.rel (!%p13_p2) target bundleno = 3 (0x3), region = 67 }
 0x58e   :  { %2212 = vsyncpa [#allocation3], 1 }
 0x58f   :  { %2214 = vsyncpa [#allocation3 + $0x1], 1 }

</bundles_post_ra>
